<compile_context>
chip_gen: v5e
topology: v5e:2x2
jax: 0.10.0
libtpu: 0.0.40
codegen_flags: <defaults>
</compile_context>

<pallas_src>
import numpy as np
import jax
import jax.numpy as jnp
from jax.experimental import pallas as pl
from jax.experimental.pallas import tpu as pltpu


# -----------------------------------------------------------------------------
# ValueLayer parameters (nn.Linear 1->100, 100->100, 100->1).
# TODO(synk): the ValueLayer MLP is only consumed by learn_encoding(), which
# forward() never calls; parameters are initialized deterministically here for
# completeness but are not executed.
# -----------------------------------------------------------------------------
def init_value_layer_params(key, mlp_layers=(1, 100, 100, 1)):
    params = []
    in_c = mlp_layers[0]
    for out_c in mlp_layers[1:]:
        key, kw, kb = jax.random.split(key, 3)
        bound = 1.0 / float(np.sqrt(in_c))
        w = jax.random.uniform(kw, (out_c, in_c), jnp.float32, -bound, bound)
        bvec = jax.random.uniform(kb, (out_c,), jnp.float32, -bound, bound)
        params.append((w, bvec))
        in_c = out_c
    return params


def _round_up(x, m):
    return ((x + m - 1) // m) * m


# -----------------------------------------------------------------------------
# Pallas kernel: scatter-add as one MXU matmul per (spatial-tile, event-tile)
#   out[2BT, HW_tile] += vals[2BT, tile_n] @ onehot[tile_n, HW_tile]
# where row = 2T*b + T*p + bin carries the (batch, polarity, time-bin) choice
# and the one-hot encodes only the spatial index col = x + W*y.
# -----------------------------------------------------------------------------
def _make_vox_kernel(T, R_pad, tile_vs, use_bf16):
    dot_dtype = jnp.bfloat16 if use_bf16 else jnp.float32

    def kernel(counts_ref, ev_rows_ref, ev_col_ref, out_ref):
        vs_i = pl.program_id(0)          # spatial-column tile (parallel axis)
        n_i = pl.program_id(1)           # event tile (reduction axis, last)
        num_n = pl.num_programs(1)

        # init the resident output tile on the first event tile
        @pl.when(n_i == 0)
        def _():
            out_ref[...] = jnp.zeros_like(out_ref)

        # skip steps whose (spatial tile, event tile) pair holds no events
        @pl.when(counts_ref[vs_i * num_n + n_i] > 0)
        def _():
            # ---- lane-dense per-event rows: [8, tile_n] (precomputed in wrapper) ----
            ev = ev_rows_ref[...]
            t_scaled = ev[0:1, :]        # t / tmax[b] * T          [1, tile_n]
            row_base = ev[1:2, :]        # 2T*b + T*p (as f32)      [1, tile_n]
            valid = ev[2:3, :]           # 0 for padded events      [1, tile_n]
            tile_n = ev.shape[1]

            # vals[r, n] = clamp(1 - |t_scaled_n - (r - row_base_n)|, 0)
            # masked to r - row_base in [0, T)  (rows of other (b,p) blocks -> 0)
            row_iota = jax.lax.broadcasted_iota(
                jnp.int32, (R_pad, tile_n), 0).astype(jnp.float32)
            r_rel = row_iota - row_base                              # [R_pad, tile_n]
            w = jnp.maximum(1.0 - jnp.abs(t_scaled - r_rel), 0.0)
            in_range = jnp.logical_and(r_rel >= 0.0, r_rel < float(T))
            vals = jnp.where(in_range, w, 0.0) * valid               # f32

            # ---- spatial one-hot over this tile's columns ----
            col = ev_col_ref[:, 0:1]                                 # [tile_n, 1] int32
            col_local = col - vs_i * tile_vs
            lane_iota = jax.lax.broadcasted_iota(jnp.int32, (1, tile_vs), 1)
            onehot = (col_local == lane_iota)                        # [tile_n, tile_vs]

            # scatter-add == one MXU matmul; cast operands only at the dot
            out_ref[...] += jnp.dot(vals.astype(dot_dtype),
                                    onehot.astype(dot_dtype),
                                    preferred_element_type=jnp.float32)

    return kernel


def quantization_layer_forward(events, size, batch_size=None, *,
                               tile_n=1024, tile_vs=2048, use_bf16=True):
    """events: [N, 5] float32, columns in 'tyxpb' order; size = (T, H, W).

    batch_size: pass B statically to keep dispatch fully async (recommended).
    use_bf16:   cast the matmul operands to bf16 (exact one-hot, ~1e-3 rel on
                the trilinear weights).  Set False for bit-level f32 checking.
    """
    T, H, W = size
    HW = H * W
    N = events.shape[0]
    if batch_size is None:
        # TODO(synk): fallback mirrors torch's `(1 + events[-1, bi]).item()` but
        # forces a device->host sync; prefer passing batch_size statically.
        batch_size = int(jax.device_get(events[-1, 4])) + 1
    B = int(batch_size)
    R = 2 * B * T                         # output rows: (b, p, bin)
    R_pad = _round_up(R, 8)

    events = events.astype(jnp.float32)
    t = events[:, 0]
    y = events[:, 1]
    x = events[:, 2]
    p = events[:, 3]
    b = events[:, 4]
    b_i = jnp.round(b).astype(jnp.int32)
    p_i = jnp.round(p).astype(jnp.int32)

    # per-batch max timestamp: single segment-max pass (hoisted out of kernel)
    tmax = jnp.full((B,), -jnp.inf, jnp.float32).at[b_i].max(t)
    t_scaled = (t / tmax[b_i]) * float(T)

    # vs-invariant per-event index math, done once in the wrapper.
    # TODO(synk): torch truncates the combined flat index; identical for
    # integer-valued event coordinates (the standard case).
    col = jnp.round(x + float(W) * y).astype(jnp.int32)        # spatial column
    row_base = ((2 * T) * b_i + T * p_i).astype(jnp.float32)   # output row base

    # ---- tile sizes (lane-dense, multiples of 128, clipped to the problem) ----
    tile_n = min(tile_n, _round_up(N, 128))
    n_pad = _round_up(N, tile_n)
    hw_pad = _round_up(HW, 128)
    tile_vs = min(tile_vs, hw_pad)
    # keep >=2 tiles on the parallel axis when possible (v7x has 2 TensorCores)
    if tile_vs == hw_pad and hw_pad >= 256:
        tile_vs = _round_up(hw_pad // 2, 128)
    vs_pad = _round_up(hw_pad, tile_vs)
    num_n = n_pad // tile_n
    num_vs = vs_pad // tile_vs

    # lane-dense per-event rows [8, n_pad]: t_scaled, row_base, valid
    ev_rows = jnp.zeros((8, n_pad), jnp.float32)
    ev_rows = ev_rows.at[0, :N].set(t_scaled)
    ev_rows = ev_rows.at[1, :N].set(row_base)
    ev_rows = ev_rows.at[2, :N].set(1.0)

    # sublane-dense int32 spatial column [n_pad, 8] (col in column 0;
    # padding = -1 so it can never match the lane iota)
    ev_col = jnp.full((n_pad, 8), -1, jnp.int32)
    ev_col = ev_col.at[:N, 0].set(col)

    # per-(vs_tile, n_tile) occupancy counts -> SMEM via scalar prefetch
    ev_vs = col // tile_vs
    ev_nt = jnp.arange(N, dtype=jnp.int32) // tile_n
    counts = jnp.zeros((num_vs * num_n,), jnp.int32).at[ev_vs * num_n + ev_nt].add(1)

    # VMEM budget derived from the actual buffers; cap at 48 MiB for v7x (64 MiB
    # physical), floor at 32 MiB so v5e/v6e don't get squeezed by the default.
    dot_bytes = 2 if use_bf16 else 4
    acc_bytes = 2 * R_pad * tile_vs * 4                       # resident acc (+ writeback)
    in_bytes = 2 * (8 * tile_n * 4 + tile_n * 128 * 4)        # double-buffered inputs
    tmp_bytes = (tile_n * tile_vs + R_pad * tile_n) * (4 + dot_bytes)
    vmem_limit = int(min(max(2 * (acc_bytes + in_bytes + tmp_bytes), 32 << 20), 48 << 20))

    kernel = _make_vox_kernel(T, R_pad, tile_vs, use_bf16)
    grid = (num_vs, num_n)               # (parallel, reduction-last)

    vox = pl.pallas_call(
        kernel,
        out_shape=jax.ShapeDtypeStruct((R_pad, vs_pad), jnp.float32),
        grid_spec=pltpu.PrefetchScalarGridSpec(
            num_scalar_prefetch=1,       # counts table -> SMEM
            grid=grid,
            in_specs=[
                # lane-dense event rows (index_maps also receive the prefetch ref)
                pl.BlockSpec((8, tile_n), lambda vi, ni, cnt: (0, ni)),
                # sublane-dense int32 spatial column
                pl.BlockSpec((tile_n, 8), lambda vi, ni, cnt: (ni, 0)),
            ],
            # output tile resident across the event/reduction axis
            out_specs=pl.BlockSpec((R_pad, tile_vs), lambda vi, ni, cnt: (0, vi)),
        ),
        compiler_params=pltpu.CompilerParams(
            dimension_semantics=("parallel", "arbitrary"),
            vmem_limit_bytes=vmem_limit,
        ),
    )(counts, ev_rows, ev_col)

    # drop padding rows/cols; [2BT, HW] -> [B, 2, T, H, W] is a pure view
    # (exactly torch's event_vox.view(-1, 2, T, H, W) flat-index convention).
    return vox[:R, :HW].reshape(B, 2, T, H, W)


# -----------------------------------------------------------------------------
# Pure-JAX reference for correctness checking (mirrors the torch code).
# -----------------------------------------------------------------------------
def reference_forward(events, size, B):
    T, H, W = size
    t, y, x, p, b = (events[:, 0], events[:, 1], events[:, 2],
                     events[:, 3], events[:, 4])
    for bb in range(B):
        mask = b == bb
        tmax = jnp.max(jnp.where(mask, t, -jnp.inf))
        t = jnp.where(mask, t / tmax, t)
    idx_before = x + W * y + W * H * T * p + W * H * T * 2 * b
    V = 2 * B * T * H * W
    vox = jnp.zeros((V,), jnp.float32)
    ts = t * T
    for i in range(T):
        values = jnp.maximum(1.0 - jnp.abs(ts - i), 0.0)
        idx = jnp.round(idx_before + W * H * i).astype(jnp.int32)
        vox = vox.at[idx].add(values)
    return vox.reshape(B, 2, T, H, W)


if __name__ == "__main__":
    key = jax.random.PRNGKey(0)
    T, H, W = 4, 8, 8
    size = (T, H, W)
    B = 2
    N = 256

    k1, k2, k3, k4, kparams = jax.random.split(key, 5)
    x = jax.random.randint(k1, (N,), 0, W).astype(jnp.float32)
    y = jax.random.randint(k2, (N,), 0, H).astype(jnp.float32)
    t = jax.random.uniform(k3, (N,), jnp.float32, 0.01, 1.0)
    p = jax.random.randint(k4, (N,), 0, 2).astype(jnp.float32)
    b = jnp.concatenate(
        [jnp.zeros((N // 2,)), jnp.ones((N - N // 2,))]).astype(jnp.float32)

    # 'tyxpb' column order, shape [N, 5]
    events = jnp.stack([t, y, x, p, b], axis=1)

    # deterministic ValueLayer MLP params (unused in forward, see TODO above)
    _ = init_value_layer_params(kparams)

    ref = reference_forward(events, size, B)

    # f32 path: bit-faithful to the reference
    out_f32 = quantization_layer_forward(events, size, batch_size=B,
                                         use_bf16=False)
    out_f32 = jax.block_until_ready(out_f32)
    assert out_f32.shape == (B, 2, T, H, W)
    np.testing.assert_allclose(np.asarray(out_f32), np.asarray(ref),
                               rtol=1e-5, atol=1e-5)

    # bf16-operand path (default): only the trilinear weights round to bf16
    out_bf16 = quantization_layer_forward(events, size, batch_size=B,
                                          use_bf16=True)
    out_bf16 = jax.block_until_ready(out_bf16)
    assert out_bf16.shape == (B, 2, T, H, W)
    np.testing.assert_allclose(np.asarray(out_bf16), np.asarray(ref),
                               rtol=2e-2, atol=5e-2)

    print("KERNEL_OK")
</pallas_src>

<mosaic_0001>
module attributes {stable_mosaic.version = 11 : i64} {
  func.func @kernel(%arg0: i32, %arg1: i32, %arg2: memref<1xi32, #tpu.memory_space<smem>>, %arg3: memref<8x256xf32, #tpu.memory_space<vmem>>, %arg4: memref<256x8xi32, #tpu.memory_space<vmem>>, %arg5: memref<16x128xf32, #tpu.memory_space<vmem>>) attributes {dimension_semantics = [#tpu.dimension_semantics<parallel>, #tpu.dimension_semantics<arbitrary>], iteration_bounds = array<i64: 1, 1>, scalar_prefetch = 1 : i64, scratch_operands = 0 : i64, tpu.core_type = #tpu.core_type<tc>, window_params = [{transform_indices = @transform_0, window_bounds = array<i64: 8, 256>}, {transform_indices = @transform_1, window_bounds = array<i64: 256, 8>}, {transform_indices = @transform_2, window_bounds = array<i64: 16, 128>}]} {
    %c0_i32 = arith.constant 0 : i32
    %0 = arith.cmpi eq, %arg1, %c0_i32 : i32
    %1 = arith.extui %0 : i1 to i32
    %c0_i32_0 = arith.constant 0 : i32
    %2 = arith.cmpi ne, %1, %c0_i32_0 : i32
    scf.if %2 {
      %cst = arith.constant 0.000000e+00 : f32
      %10 = vector.broadcast %cst : f32 to vector<16x128xf32>
      %c0 = arith.constant 0 : index
      %c0_3 = arith.constant 0 : index
      %11 = vector.load %arg5[%c0, %c0_3] : memref<16x128xf32, #tpu.memory_space<vmem>>, vector<16x128xf32>
      tpu.vector_store %arg5[%c0, %c0_3], %10 {strides = array<i32>} : memref<16x128xf32, #tpu.memory_space<vmem>>, vector<16x128xf32>,
    } else {
    }
    %c1_i32 = arith.constant 1 : i32
    %3 = arith.muli %arg0, %c1_i32 : i32
    %4 = arith.addi %3, %arg1 : i32
    %5 = arith.index_cast %4 : i32 to index
    %6 = memref.load %arg2[%5] : memref<1xi32, #tpu.memory_space<smem>>
    %c0_i32_1 = arith.constant 0 : i32
    %7 = arith.cmpi sgt, %6, %c0_i32_1 : i32
    %8 = arith.extui %7 : i1 to i32
    %c0_i32_2 = arith.constant 0 : i32
    %9 = arith.cmpi ne, %8, %c0_i32_2 : i32
    scf.if %9 {
      %c0 = arith.constant 0 : index
      %c0_3 = arith.constant 0 : index
      %10 = vector.load %arg3[%c0, %c0_3] : memref<8x256xf32, #tpu.memory_space<vmem>>, vector<8x256xf32>
      %11 = vector.extract_strided_slice %10 {offsets = [0, 0], sizes = [1, 256], strides = [1, 1]} : vector<8x256xf32> to vector<1x256xf32>
      %12 = vector.extract_strided_slice %10 {offsets = [1, 0], sizes = [1, 256], strides = [1, 1]} : vector<8x256xf32> to vector<1x256xf32>
      %13 = vector.extract_strided_slice %10 {offsets = [2, 0], sizes = [1, 256], strides = [1, 1]} : vector<8x256xf32> to vector<1x256xf32>
      %14 = tpu.iota {dimensions = array<i32: 0>} : vector<16x256xi32>
      %15 = arith.sitofp %14 : vector<16x256xi32> to vector<16x256xf32>
      %16 = vector.broadcast %12 : vector<1x256xf32> to vector<16x256xf32>
      %17 = arith.subf %15, %16 : vector<16x256xf32>
      %18 = vector.broadcast %11 : vector<1x256xf32> to vector<16x256xf32>
      %19 = arith.subf %18, %17 : vector<16x256xf32>
      %20 = math.absf %19 : vector<16x256xf32>
      %cst = arith.constant 1.000000e+00 : f32
      %21 = vector.broadcast %cst : f32 to vector<16x256xf32>
      %22 = arith.subf %21, %20 : vector<16x256xf32>
      %cst_4 = arith.constant 0.000000e+00 : f32
      %23 = vector.broadcast %cst_4 : f32 to vector<16x256xf32>
      %24 = arith.maximumf %22, %23 : vector<16x256xf32>
      %cst_5 = arith.constant 0.000000e+00 : f32
      %25 = vector.broadcast %cst_5 : f32 to vector<16x256xf32>
      %26 = arith.cmpf oge, %17, %25 : vector<16x256xf32>
      %cst_6 = arith.constant 4.000000e+00 : f32
      %27 = vector.broadcast %cst_6 : f32 to vector<16x256xf32>
      %28 = arith.cmpf olt, %17, %27 : vector<16x256xf32>
      %29 = arith.andi %26, %28 : vector<16x256xi1>
      %cst_7 = arith.constant 0.000000e+00 : f32
      %30 = vector.broadcast %cst_7 : f32 to vector<16x256xf32>
      %31 = arith.select %29, %24, %30 : vector<16x256xi1>, vector<16x256xf32>
      %32 = vector.broadcast %13 : vector<1x256xf32> to vector<16x256xf32>
      %33 = arith.mulf %31, %32 : vector<16x256xf32>
      %c0_8 = arith.constant 0 : index
      %c0_9 = arith.constant 0 : index
      %34 = vector.load %arg4[%c0_8, %c0_9] : memref<256x8xi32, #tpu.memory_space<vmem>>, vector<256x1xi32>
      %c128_i32 = arith.constant 128 : i32
      %35 = arith.muli %arg0, %c128_i32 : i32
      %36 = vector.broadcast %35 : i32 to vector<256x1xi32>
      %37 = arith.subi %34, %36 : vector<256x1xi32>
      %38 = tpu.iota {dimensions = array<i32: 1>} : vector<1x128xi32>
      %39 = vector.broadcast %37 : vector<256x1xi32> to vector<256x128xi32>
      %40 = vector.broadcast %38 : vector<1x128xi32> to vector<256x128xi32>
      %41 = arith.cmpi eq, %39, %40 : vector<256x128xi32>
      %c0_10 = arith.constant 0 : index
      %c0_11 = arith.constant 0 : index
      %42 = vector.load %arg5[%c0_10, %c0_11] : memref<16x128xf32, #tpu.memory_space<vmem>>, vector<16x128xf32>
      %43 = arith.extui %41 : vector<256x128xi1> to vector<256x128xi32>
      %44 = arith.sitofp %43 : vector<256x128xi32> to vector<256x128xf32>
      %cst_12 = arith.constant dense<0.000000e+00> : vector<16x128xf32>
      %45 = tpu.matmul %33, %44, %cst_12 {dimension_numbers = #tpu.dot_dimension_numbers<[1], [0], [0], [1], [0, 0, 1, 1], [], []>} : vector<16x256xf32>, vector<256x128xf32>, vector<16x128xf32> -> vector<16x128xf32>
      %46 = arith.addf %42, %45 : vector<16x128xf32>
      %c0_13 = arith.constant 0 : index
      %c0_14 = arith.constant 0 : index
      %47 = vector.load %arg5[%c0_13, %c0_14] : memref<16x128xf32, #tpu.memory_space<vmem>>, vector<16x128xf32>
      tpu.vector_store %arg5[%c0_13, %c0_14], %46 {strides = array<i32>} : memref<16x128xf32, #tpu.memory_space<vmem>>, vector<16x128xf32>,
    } else {
    }
    return
  }
  func.func @transform_0(%arg0: i32, %arg1: i32, %arg2: memref<1xi32, #tpu.memory_space<smem>>) -> (i32, i32) {
    %c0_i32 = arith.constant 0 : i32
    %c0_i32_0 = arith.constant 0 : i32
    return %c0_i32, %arg1 : i32, i32
  }
  func.func @transform_1(%arg0: i32, %arg1: i32, %arg2: memref<1xi32, #tpu.memory_space<smem>>) -> (i32, i32) {
    %c0_i32 = arith.constant 0 : i32
    %c0_i32_0 = arith.constant 0 : i32
    return %arg1, %c0_i32 : i32, i32
  }
  func.func @transform_2(%arg0: i32, %arg1: i32, %arg2: memref<1xi32, #tpu.memory_space<smem>>) -> (i32, i32) {
    %c0_i32 = arith.constant 0 : i32
    %c0_i32_0 = arith.constant 0 : i32
    return %c0_i32, %arg0 : i32, i32
  }
}

</mosaic_0001>

<bundles_post_ra>
// kernel: tpu_custom_call.1
= control target key start
LH: loop header
LB: loop body
LE: loop exit
PB: predicated region body
PF: predicated region fallthrough
CT: control target
= control target key end

     0   :  { %9 = vsyncpa [#allocation5], 0  ;;  %v541_v0 = vmov 0.0   ;;  %s802_s0 = inlined_call_operand.<no memory space> [shape: s32[1], index: 0, kind: input, shape index: {}]   ;;  %s803_s1 = inlined_call_operand.vmem [shape: f32[8,256], index: 1, kind: input, shape index: {}]   ;;  %s804_s2 = inlined_call_operand.vmem [shape: s32[256,8], index: 2, kind: input, shape index: {}]   ;;  %s805_s3 = inlined_call_operand.hbm [shape: f32[16,128], index: 3, kind: output, shape index: {}]  }
   0x1   :  { %18 = vst [vmem:[#allocation4] sm:$0xff] %v541_v0  ;;  %p409_p0 = scmp.le.s32.totalorder %s802_s0, 0 }
   0x2   :  { %19 = vst [vmem:[#allocation4 + $0x8] sm:$0xff] %v541_v0 }
   0x3   :  { %25 = sbr.rel (%p409_p0) target bundleno = 345 (0x159), region = 17 }
   0x8   :  { %v94_v1 = vld [vmem:[%s804_s2 + $0x78] sm:$0xff]  ;;  %v93_v2 = vld [vmem:[%s804_s2 + $0x70] sm:$0xff]  ;;  %v92_v3 = vld [vmem:[%s804_s2 + $0x68] sm:$0xff]  ;;  %v542_v4 = vmov 0   ;;  %v28_v36 = vlaneseq  ;;  %v543_v41 = vmov 1.0  }
   0x9   :  { %514 = vset.pattern.permute.xlu2 %v542_v4  ;;  %513 = vset.pattern.permute.xlu1 %v542_v4  ;;  %v109_v5 = vld [vmem:[%s804_s2 + $0xf0] sm:$0xff]  ;;  %v110_v6 = vld [vmem:[%s804_s2 + $0xf8] sm:$0xff]  ;;  %v108_v7 = vld [vmem:[%s804_s2 + $0xe8] sm:$0xff] }
   0xa   :  { %512 = vset.pattern.permute.xlu0 %v542_v4  ;;  %190 = vperm.xlu1 %513, %v93_v2   ;;  %v107_v8 = vld [vmem:[%s804_s2 + $0xe0] sm:$0xff]  ;;  %v90_v10 = vld [vmem:[%s804_s2 + $0x58] sm:$0xff]  ;;  %v89_v11 = vld [vmem:[%s804_s2 + $0x50] sm:$0xff]  ;;  %v667_v37 = vand.u32 127, %v28_v36  ;;  %v29_v56 = vshrl.u32 %v28_v36, 7 }
   0xb   :  { %193 = vperm.xlu0 %512, %v94_v1   ;;  %187 = vperm.xlu2 %514, %v92_v3   ;;  %v91_v9 = vld [vmem:[%s804_s2 + $0x60] sm:$0xff]  ;;  %v106_v12 = vld [vmem:[%s804_s2 + $0xd8] sm:$0xff]  ;;  %v105_v13 = vld [vmem:[%s804_s2 + $0xd0] sm:$0xff] }
   0xc   :  { %v104_v14 = vld [vmem:[%s804_s2 + $0xc8] sm:$0xff]  ;;  %v87_v16 = vld [vmem:[%s804_s2 + $0x40] sm:$0xff]  ;;  %v86_v17 = vld [vmem:[%s804_s2 + $0x38] sm:$0xff]  ;;  %v30_v58 = vadd.s32 8, %v29_v56  ;;  %v31_v2 = vcvt.s32.f32 %v29_v56 }
   0xd   :  { %v88_v15 = vld [vmem:[%s804_s2 + $0x48] sm:$0xff]  ;;  %v103_v18 = vld [vmem:[%s804_s2 + $0xc0] sm:$0xff]  ;;  %v102_v19 = vld [vmem:[%s804_s2 + $0xb8] sm:$0xff] }
   0xe   :  { %v101_v20 = vld [vmem:[%s804_s2 + $0xb0] sm:$0xff]  ;;  %v84_v22 = vld [vmem:[%s804_s2 + $0x28] sm:$0xff]  ;;  %v83_v23 = vld [vmem:[%s804_s2 + $0x20] sm:$0xff]  ;;  %v32_v62 = vcvt.s32.f32 %v30_v58 }
   0xf   :  { %v85_v21 = vld [vmem:[%s804_s2 + $0x30] sm:$0xff]  ;;  %v100_v24 = vld [vmem:[%s804_s2 + $0xa8] sm:$0xff]  ;;  %v99_v25 = vld [vmem:[%s804_s2 + $0xa0] sm:$0xff] }
  0x10   :  { %v98_v26 = vld [vmem:[%s804_s2 + $0x98] sm:$0xff]  ;;  %v81_v28 = vld [vmem:[%s804_s2 + $0x10] sm:$0xff]  ;;  %v80_v29 = vld [vmem:[%s804_s2 + $0x8] sm:$0xff] }
  0x11   :  { %v82_v27 = vld [vmem:[%s804_s2 + $0x18] sm:$0xff]  ;;  %v97_v30 = vld [vmem:[%s804_s2 + $0x90] sm:$0xff]  ;;  %v96_v31 = vld [vmem:[%s804_s2 + $0x88] sm:$0xff] }
  0x12   :  { %238 = vperm.xlu1 %513, %v109_v5   ;;  %v95_v32 = vld [vmem:[%s804_s2 + $0x80] sm:$0xff]  ;;  %v736_v61 = vld [vmem:[%s803_s1 + $0x8] sm:$0xff] }
  0x13   :  { %241 = vperm.xlu0 %512, %v110_v6   ;;  %235 = vperm.xlu2 %514, %v108_v7   ;;  %v79_v33 = vld [vmem:[%s804_s2] sm:$0xff]  ;;  %v34_v1 = vperm.slane %v736_v61, 1  ;;  %v74_v36 = vperm.slane %v736_v61, 2 }
  0x14   :  { %v728_v60 = vld [vmem:[%s803_s1] sm:$0xff] }
  0x15   :  { %v33_v63 = vperm.slane %v728_v60, 1  ;;  %v39_v6 = vperm.slane %v728_v60, 0  ;;  %v38_v7 = vsub.f32 %v32_v62, %v34_v1 }
  0x17   :  { %v37_v4 = vsub.f32 %v32_v62, %v33_v63 }
  0x1a   :  { %232 = vperm.xlu1 %513, %v107_v8   ;;  %v40_v8 = vperm.slane %v736_v61, 0 }
  0x1b   :  { %184 = vperm.xlu0 %512, %v91_v9   ;;  %181 = vperm.xlu2 %514, %v90_v10   ;;  %v35_v9 = vsub.f32 %v31_v2, %v33_v63  ;;  %v36_v10 = vsub.f32 %v31_v2, %v34_v1 }
  0x22   :  { %178 = vperm.xlu1 %513, %v89_v11   ;;  %v43_v11 = vsub.f32 %v39_v6, %v37_v4 }
  0x23   :  { %229 = vperm.xlu0 %512, %v106_v12   ;;  %226 = vperm.xlu2 %514, %v105_v13   ;;  %v44_v12 = vsub.f32 %v40_v8, %v38_v7  ;;  %v41_v13 = vsub.f32 %v39_v6, %v35_v9 }
  0x2a   :  { %223 = vperm.xlu1 %513, %v104_v14   ;;  %v42_v14 = vsub.f32 %v40_v8, %v36_v10 }
  0x2b   :  { %175 = vperm.xlu0 %512, %v88_v15   ;;  %172 = vperm.xlu2 %514, %v87_v16  }
  0x32   :  { %169 = vperm.xlu1 %513, %v86_v17  }
  0x33   :  { %220 = vperm.xlu0 %512, %v103_v18   ;;  %217 = vperm.xlu2 %514, %v102_v19   ;;  %v47_v18 = vand.u32 2147483647, %v43_v11  ;;  %v48_v19 = vand.u32 2147483647, %v44_v12 }
  0x3a   :  { %214 = vperm.xlu1 %513, %v101_v20   ;;  %v45_v20 = vand.u32 2147483647, %v41_v13 }
  0x3b   :  { %166 = vperm.xlu0 %512, %v85_v21   ;;  %163 = vperm.xlu2 %514, %v84_v22   ;;  %v46_v21 = vand.u32 2147483647, %v42_v14  ;;  %v51_v22 = vsub.f32 1.0, %v47_v18 }
  0x42   :  { %160 = vperm.xlu1 %513, %v83_v23   ;;  %v52_v23 = vsub.f32 1.0, %v48_v19 }
  0x43   :  { %211 = vperm.xlu0 %512, %v100_v24   ;;  %208 = vperm.xlu2 %514, %v99_v25   ;;  %v49_v24 = vsub.f32 1.0, %v45_v20  ;;  %v50_v25 = vsub.f32 1.0, %v46_v21 }
  0x4a   :  { %205 = vperm.xlu1 %513, %v98_v26  }
  0x4b   :  { %157 = vperm.xlu0 %512, %v82_v27   ;;  %154 = vperm.xlu2 %514, %v81_v28  }
  0x52   :  { %151 = vperm.xlu1 %513, %v80_v29  }
  0x53   :  { %202 = vperm.xlu0 %512, %v97_v30   ;;  %199 = vperm.xlu2 %514, %v96_v31   ;;  %v55_v30 = vmax.f32 %v51_v22, 0.0  ;;  %v56_v31 = vmax.f32 %v52_v23, 0.0 }
  0x5a   :  { %196 = vperm.xlu1 %513, %v95_v32  }
  0x5b   :  { %148 = vperm.xlu0 %512, %v79_v33   ;;  %v53_v33 = vmax.f32 %v49_v24, 0.0 }
  0x65   :  { %v188_v34 = vpop.permute.xlu2 %187 }
  0x66   :  { %vm256_vm1 = vcmp.eq.s32.totalorder %v188_v34, %v667_v37  ;;  %v54_v34 = vmax.f32 %v50_v25, 0.0 }
  0x6d   :  { %v236_v35 = vpop.permute.xlu2 %235 }
  0x6e   :  { %vm272_vm5 = vcmp.eq.s32.totalorder %v236_v35, %v667_v37  ;;  %v73_v35 = vperm.slane %v728_v60, 2 }
  0x75   :  { %v182_v40 = vpop.permute.xlu2 %181 }
  0x76   :  { %vm254_vm8 = vcmp.eq.s32.totalorder %v182_v40, %v667_v37 }
  0x7c   :  { %v191_v38 = vpop.permute.xlu1 %190 }
  0x7d   :  { %v194_v39 = vpop.permute.xlu0 %193  ;;  %vm257_vm2 = vcmp.eq.s32.totalorder %v191_v38, %v667_v37  ;;  %v227_v44 = vpop.permute.xlu2 %226 }
  0x7e   :  { %vm258_vm0 = vcmp.eq.s32.totalorder %v194_v39, %v667_v37  ;;  %vm269_vm11 = vcmp.eq.s32.totalorder %v227_v44, %v667_v37 }
  0x7f   :  { %442 = vmatpush.msk.msra.mxu0 %vm258_vm0, %v543_v41  ;;  %474 = vmatpush.msk.msra.mxu2 %vm258_vm0, %v543_v41 }
  0x81   :  { %443 = vmatpush.msk.msra.mxu0 %vm257_vm2, %v543_v41  ;;  %475 = vmatpush.msk.msra.mxu2 %vm257_vm2, %v543_v41 }
  0x83   :  { %444 = vmatpush.msk.msra.mxu0 %vm256_vm1, %v543_v41  ;;  %476 = vmatpush.msk.msra.mxu2 %vm256_vm1, %v543_v41 }
  0x84   :  { %v239_v42 = vpop.permute.xlu1 %238 }
  0x85   :  { %v242_v43 = vpop.permute.xlu0 %241  ;;  %vm273_vm4 = vcmp.eq.s32.totalorder %v239_v42, %v667_v37  ;;  %v173_v47 = vpop.permute.xlu2 %172 }
  0x86   :  { %vm274_vm3 = vcmp.eq.s32.totalorder %v242_v43, %v667_v37  ;;  %vm251_vm14 = vcmp.eq.s32.totalorder %v173_v47, %v667_v37 }
  0x87   :  { %458 = vmatpush.msk.msra.mxu1 %vm274_vm3, %v543_v41  ;;  %490 = vmatpush.msk.msra.mxu3 %vm274_vm3, %v543_v41 }
  0x89   :  { %459 = vmatpush.msk.msra.mxu1 %vm273_vm4, %v543_v41  ;;  %491 = vmatpush.msk.msra.mxu3 %vm273_vm4, %v543_v41 }
  0x8b   :  { %460 = vmatpush.msk.msra.mxu1 %vm272_vm5, %v543_v41  ;;  %492 = vmatpush.msk.msra.mxu3 %vm272_vm5, %v543_v41 }
  0x8c   :  { %v233_v45 = vpop.permute.xlu1 %232 }
  0x8d   :  { %vm271_vm6 = vcmp.eq.s32.totalorder %v233_v45, %v667_v37  ;;  %v185_v46 = vpop.permute.xlu0 %184  ;;  %v218_v51 = vpop.permute.xlu2 %217 }
  0x8e   :  { %vm255_vm7 = vcmp.eq.s32.totalorder %v185_v46, %v667_v37  ;;  %461 = vmatpush.msk.msra.mxu1 %vm271_vm6, %v543_v41  ;;  %493 = vmatpush.msk.msra.mxu3 %vm271_vm6, %v543_v41  ;;  %vm266_vm1 = vcmp.eq.s32.totalorder %v218_v51, %v667_v37 }
  0x8f   :  { %445 = vmatpush.msk.msra.mxu0 %vm255_vm7, %v543_v41  ;;  %477 = vmatpush.msk.msra.mxu2 %vm255_vm7, %v543_v41 }
  0x91   :  { %446 = vmatpush.msk.msra.mxu0 %vm254_vm8, %v543_v41  ;;  %478 = vmatpush.msk.msra.mxu2 %vm254_vm8, %v543_v41 }
  0x94   :  { %v179_v48 = vpop.permute.xlu1 %178 }
  0x95   :  { %v230_v49 = vpop.permute.xlu0 %229  ;;  %vm253_vm9 = vcmp.eq.s32.totalorder %v179_v48, %v667_v37  ;;  %v164_v55 = vpop.permute.xlu2 %163 }
  0x96   :  { %vm270_vm10 = vcmp.eq.s32.totalorder %v230_v49, %v667_v37  ;;  %447 = vmatpush.msk.msra.mxu0 %vm253_vm9, %v543_v41  ;;  %479 = vmatpush.msk.msra.mxu2 %vm253_vm9, %v543_v41  ;;  %vm248_vm4 = vcmp.eq.s32.totalorder %v164_v55, %v667_v37 }
  0x97   :  { %462 = vmatpush.msk.msra.mxu1 %vm270_vm10, %v543_v41  ;;  %494 = vmatpush.msk.msra.mxu3 %vm270_vm10, %v543_v41 }
  0x99   :  { %463 = vmatpush.msk.msra.mxu1 %vm269_vm11, %v543_v41  ;;  %495 = vmatpush.msk.msra.mxu3 %vm269_vm11, %v543_v41  ;;  %vm59_vm11 = vcmp.ge.f32.partialorder %v37_v4, 0.0 }
  0x9c   :  { %v224_v50 = vpop.permute.xlu1 %223 }
  0x9d   :  { %vm268_vm12 = vcmp.eq.s32.totalorder %v224_v50, %v667_v37  ;;  %v176_v52 = vpop.permute.xlu0 %175  ;;  %v209_v0 = vpop.permute.xlu2 %208  ;;  %v275_v50 = vld [vmem:[#allocation4] sm:$0xff] }
  0x9e   :  { %vm252_vm13 = vcmp.eq.s32.totalorder %v176_v52, %v667_v37  ;;  %464 = vmatpush.msk.msra.mxu1 %vm268_vm12, %v543_v41  ;;  %496 = vmatpush.msk.msra.mxu3 %vm268_vm12, %v543_v41  ;;  %vm263_vm7 = vcmp.eq.s32.totalorder %v209_v0, %v667_v37  ;;  %vm63_vm12 = vcmp.lt.f32.partialorder %v37_v4, 4.0 }
  0x9f   :  { %448 = vmatpush.msk.msra.mxu0 %vm252_vm13, %v543_v41  ;;  %480 = vmatpush.msk.msra.mxu2 %vm252_vm13, %v543_v41  ;;  %vm60_vm13 = vcmp.ge.f32.partialorder %v38_v7, 0.0 }
  0xa1   :  { %449 = vmatpush.msk.msra.mxu0 %vm251_vm14, %v543_v41  ;;  %481 = vmatpush.msk.msra.mxu2 %vm251_vm14, %v543_v41  ;;  %vm64_vm14 = vcmp.lt.f32.partialorder %v38_v7, 4.0 }
  0xa4   :  { %v170_v53 = vpop.permute.xlu1 %169 }
  0xa5   :  { %v221_v54 = vpop.permute.xlu0 %220  ;;  %vm250_vm15 = vcmp.eq.s32.totalorder %v170_v53, %v667_v37  ;;  %v155_v15 = vpop.permute.xlu2 %154 }
  0xa6   :  { %vm267_vm0 = vcmp.eq.s32.totalorder %v221_v54, %v667_v37  ;;  %450 = vmatpush.msk.msra.mxu0 %vm250_vm15, %v543_v41  ;;  %482 = vmatpush.msk.msra.mxu2 %vm250_vm15, %v543_v41  ;;  %vm245_vm10 = vcmp.eq.s32.totalorder %v155_v15, %v667_v37  ;;  %vm57_vm15 = vcmp.ge.f32.partialorder %v35_v9, 0.0 }
  0xa7   :  { %465 = vmatpush.msk.msra.mxu1 %vm267_vm0, %v543_v41  ;;  %497 = vmatpush.msk.msra.mxu3 %vm267_vm0, %v543_v41  ;;  %vm61_vm0 = vcmp.lt.f32.partialorder %v35_v9, 4.0 }
  0xa9   :  { %466 = vmatpush.msk.msra.mxu1 %vm266_vm1, %v543_v41  ;;  %498 = vmatpush.msk.msra.mxu3 %vm266_vm1, %v543_v41  ;;  %vm765_vm1 = vmand %vm59_vm11, %vm63_vm12 }
  0xaa   :  { %v71_v38 = vsel %vm765_vm1, %v55_v30, 0.0 }
  0xab   :  { %v77_v44 = vmul.f32 %v73_v35, %v71_v38 }
  0xac   :  { %v215_v57 = vpop.permute.xlu1 %214 }
  0xad   :  { %vm265_vm2 = vcmp.eq.s32.totalorder %v215_v57, %v667_v37  ;;  %v167_v59 = vpop.permute.xlu0 %166  ;;  %v200_v28 = vpop.permute.xlu2 %199 }
  0xae   :  { %vm249_vm3 = vcmp.eq.s32.totalorder %v167_v59, %v667_v37  ;;  %467 = vmatpush.msk.msra.mxu1 %vm265_vm2, %v543_v41  ;;  %499 = vmatpush.msk.msra.mxu3 %vm265_vm2, %v543_v41  ;;  %vm58_vm2 = vcmp.ge.f32.partialorder %v36_v10, 0.0 }
  0xaf   :  { %451 = vmatpush.msk.msra.mxu0 %vm249_vm3, %v543_v41  ;;  %483 = vmatpush.msk.msra.mxu2 %vm249_vm3, %v543_v41  ;;  %vm62_vm3 = vcmp.lt.f32.partialorder %v36_v10, 4.0 }
  0xb1   :  { %452 = vmatpush.msk.msra.mxu0 %vm248_vm4, %v543_v41  ;;  %484 = vmatpush.msk.msra.mxu2 %vm248_vm4, %v543_v41 }
  0xb4   :  { %v161_v3 = vpop.permute.xlu1 %160 }
  0xb5   :  { %v212_v5 = vpop.permute.xlu0 %211  ;;  %vm247_vm5 = vcmp.eq.s32.totalorder %v161_v3, %v667_v37 }
  0xb6   :  { %vm264_vm6 = vcmp.eq.s32.totalorder %v212_v5, %v667_v37  ;;  %453 = vmatpush.msk.msra.mxu0 %vm247_vm5, %v543_v41  ;;  %485 = vmatpush.msk.msra.mxu2 %vm247_vm5, %v543_v41  ;;  %vm771_vm5 = vmand %vm60_vm13, %vm64_vm14 }
  0xb7   :  { %468 = vmatpush.msk.msra.mxu1 %vm264_vm6, %v543_v41  ;;  %500 = vmatpush.msk.msra.mxu3 %vm264_vm6, %v543_v41  ;;  %v72_v39 = vsel %vm771_vm5, %v56_v31, 0.0 }
  0xb8   :  { %v78_v45 = vmul.f32 %v74_v36, %v72_v39 }
  0xb9   :  { %469 = vmatpush.msk.msra.mxu1 %vm263_vm7, %v543_v41  ;;  %501 = vmatpush.msk.msra.mxu3 %vm263_vm7, %v543_v41  ;;  %vm65_vm7 = vmand %vm57_vm15, %vm61_vm0 }
  0xba   :  { %v69_v40 = vsel %vm65_vm7, %v53_v33, 0.0 }
  0xbb   :  { %v75_v47 = vmul.f32 %v73_v35, %v69_v40 }
  0xbc   :  { %v206_v16 = vpop.permute.xlu1 %205 }
  0xbd   :  { %vm262_vm8 = vcmp.eq.s32.totalorder %v206_v16, %v667_v37  ;;  %v158_v17 = vpop.permute.xlu0 %157 }
  0xbe   :  { %vm246_vm9 = vcmp.eq.s32.totalorder %v158_v17, %v667_v37  ;;  %470 = vmatpush.msk.msra.mxu1 %vm262_vm8, %v543_v41  ;;  %502 = vmatpush.msk.msra.mxu3 %vm262_vm8, %v543_v41  ;;  %vm66_vm8 = vmand %vm58_vm2, %vm62_vm3 }
  0xbf   :  { %454 = vmatpush.msk.msra.mxu0 %vm246_vm9, %v543_v41  ;;  %486 = vmatpush.msk.msra.mxu2 %vm246_vm9, %v543_v41  ;;  %vm260_vm9 = vcmp.eq.s32.totalorder %v200_v28, %v667_v37  ;;  %v70_v42 = vsel %vm66_vm8, %v54_v34, 0.0 }
  0xc0   :  { %v76_v48 = vmul.f32 %v74_v36, %v70_v42 }
  0xc1   :  { %455 = vmatpush.msk.msra.mxu0 %vm245_vm10, %v543_v41  ;;  %487 = vmatpush.msk.msra.mxu2 %vm245_vm10, %v543_v41 }
  0xc4   :  { %v152_v26 = vpop.permute.xlu1 %151 }
  0xc5   :  { %v203_v29 = vpop.permute.xlu0 %202  ;;  %vm244_vm4 = vcmp.eq.s32.totalorder %v152_v26, %v667_v37 }
  0xc6   :  { %vm261_vm6 = vcmp.eq.s32.totalorder %v203_v29, %v667_v37  ;;  %456 = vmatpush.msk.msra.mxu0 %vm244_vm4, %v543_v41  ;;  %488 = vmatpush.msk.msra.mxu2 %vm244_vm4, %v543_v41 }
  0xc7   :  { %471 = vmatpush.msk.msra.mxu1 %vm261_vm6, %v543_v41  ;;  %503 = vmatpush.msk.msra.mxu3 %vm261_vm6, %v543_v41 }
  0xc9   :  { %472 = vmatpush.msk.msra.mxu1 %vm260_vm9, %v543_v41  ;;  %504 = vmatpush.msk.msra.mxu3 %vm260_vm9, %v543_v41 }
  0xcc   :  { %v197_v43 = vpop.permute.xlu1 %196 }
  0xcd   :  { %vm259_vm10 = vcmp.eq.s32.totalorder %v197_v43, %v667_v37  ;;  %v149_v46 = vpop.permute.xlu0 %148 }
  0xce   :  { %vm243_vm11 = vcmp.eq.s32.totalorder %v149_v46, %v667_v37  ;;  %473 = vmatpush.msk.msra.mxu1 %vm259_vm10, %v543_v41  ;;  %505 = vmatpush.msk.msra.mxu3 %vm259_vm10, %v543_v41  ;;  %v276_v37 = vld [vmem:[#allocation4 + $0x8] sm:$0xff] }
  0xcf   :  { %457 = vmatpush.msk.msra.mxu0 %vm243_vm11, %v543_v41  ;;  %489 = vmatpush.msk.msra.mxu2 %vm243_vm11, %v543_v41 }
  0xd0   :  { %360 = vmatmul.f32.vlgmr.msra.gmra.mxu2 %v77_v44  ;;  %383 = vmatmul.f32.vlgmr.msra.gmra.mxu3 %v78_v45 }
  0xd1   :  { %357 = vmatmul.f32.vlgmr.msra.gmra.mxu0 %v75_v47  ;;  %380 = vmatmul.f32.vlgmr.msra.gmra.mxu1 %v76_v48 }
 0x14e   :  { %v358_v49 = vpop.f32.mrf.mxu0  ;;  %v381_v51 = vpop.f32.mrf.mxu1 }
 0x14f   :  { %v382_v52 = vadd.f32 %v381_v51, %v358_v49 }
 0x151   :  { %v387_v53 = vadd.f32 %v382_v52, %v275_v50 }
 0x153   :  { %v361_v54 = vpop.f32.mrf.mxu2  ;;  %389 = vst [vmem:[#allocation4] sm:$0xff] %v387_v53  ;;  %v384_v55 = vpop.f32.mrf.mxu3 }
 0x154   :  { %v385_v56 = vadd.f32 %v384_v55, %v361_v54 }
 0x156   :  { %v388_v57 = vadd.f32 %v385_v56, %v276_v37 }
 0x158   :  { %390 = vst [vmem:[#allocation4 + $0x8] sm:$0xff] %v388_v57 }
 0x159 PF:  { %s397_s25 = sshll.u32 %s805_s3, 4  ;;  %s544_s26 = smov [#allocation4]   ;;  %s398_s25 = int_to_ptr.hbm [resolvable:$true] %s397_s25 }
 0x15a   :  { %s395_s27 = sshll.u32 %s544_s26, 4  ;;  %s545_s28 = smov 128   ;;  %s396_s27 = int_to_ptr.vmem [resolvable:$true] %s395_s27 }
 0x15b   :  { %s546_s29 = smov 8  }
 0x15c   :  { %403 = dma.vmem_to_hbm [thread:$0]  %s396_s27, 256, %s398_s25, [#allocation5], %s545_s28, %s545_s28, %s546_s29  }
 0x15d   :  { %539 = dma.done.wait [#allocation5], 256  }
 0x15e   :  { %540 = vsyncadd [#allocation5], 4294967040 }
 0x15f   :  { %408 = vsyncpa [#allocation5], 1 }

</bundles_post_ra>
